<compile_context>
chip_gen: v5e
topology: v5e:2x2
jax: 0.10.0
libtpu: 0.0.40
codegen_flags: <defaults>
</compile_context>

<pallas_src>
import functools

import numpy as np
import jax
import jax.numpy as jnp
from jax import lax
from jax.experimental import pallas as pl
from jax.experimental.pallas import tpu as pltpu


PARAM_ORDER = ("wqkv", "bqkv", "wo", "bo", "n1w", "n1b",
               "w1", "b1", "w2", "b2", "n2w", "n2b")


def _layernorm(z, w, b, eps):
    # Matches the module's LayerNorm: unbiased variance (torch.var default, ddof=1),
    # rsqrt (EUP) instead of divide-by-sqrt.
    d = z.shape[-1]
    mean = jnp.mean(z, axis=-1, keepdims=True)
    c = z - mean
    var = jnp.sum(c * c, axis=-1, keepdims=True) * (1.0 / (d - 1))
    return c * lax.rsqrt(var + eps) * w + b


def transformer_block_kernel(x_ref,
                             wqkv_ref, bqkv_ref, wo_ref, bo_ref,
                             n1w_ref, n1b_ref, w1_ref, b1_ref, w2_ref, b2_ref,
                             n2w_ref, n2b_ref,
                             out_ref,
                             qkv_scr, acc_scr,
                             *, num_heads, eps, compute_dtype):
    T = x_ref.shape[1]
    tq, d = out_ref.shape[1], out_ref.shape[2]
    hd = d // num_heads
    qi = pl.program_id(1)
    n_chunks = T // tq

    # --- once per sequence: fused Q|K|V projection of the full sequence into VMEM
    #     scratch.  Chunked over rows so the live f32 temp is (tq, 3d), not (T, 3d).
    #     The 1/sqrt(hd) attention scale is already folded into wq/bq on the host. ---
    @pl.when(qi == 0)
    def _():
        def _project_chunk(c, carry):
            r0 = pl.multiple_of(c * tq, tq)
            xc = x_ref[0, pl.ds(r0, tq), :].astype(compute_dtype)          # (tq, d)
            proj = jnp.dot(xc, wqkv_ref[...],
                           preferred_element_type=jnp.float32) + bqkv_ref[...]
            qkv_scr[pl.ds(r0, tq), :] = proj.astype(qkv_scr.dtype)         # (tq, 3d)
            return carry
        lax.fori_loop(0, n_chunks, _project_chunk, 0)

    row0 = pl.multiple_of(qi * tq, tq)

    # --- attention for this tile of query rows (exact softmax vs. full resident K).
    #     Each head's (tq, hd) output is folded straight into the output projection:
    #     acc += (p @ v_h) @ wo[h*hd:(h+1)*hd, :]  -> lane-dense (tq, d) accumulation,
    #     no sub-128-lane stores and no separate wo GEMM.  Bias bo seeds the acc. ---
    acc_scr[...] = jnp.broadcast_to(bo_ref[...], (tq, d)).astype(jnp.float32)
    for h in range(num_heads):                     # static, small head count -> unrolled
        qh = qkv_scr[pl.ds(row0, tq), h * hd:(h + 1) * hd]                 # (tq, hd)
        kh = qkv_scr[:, d + h * hd: d + (h + 1) * hd]                      # (T,  hd)
        vh = qkv_scr[:, 2 * d + h * hd: 2 * d + (h + 1) * hd]              # (T,  hd)
        s = lax.dot_general(qh, kh, (((1,), (1,)), ((), ())),
                            preferred_element_type=jnp.float32)            # (tq, T)
        m = jnp.max(s, axis=-1, keepdims=True)
        e = jnp.exp(s - m)
        p = e / jnp.sum(e, axis=-1, keepdims=True)          # exact softmax (no approx)
        oh = jnp.dot(p.astype(compute_dtype), vh,
                     preferred_element_type=jnp.float32)                   # (tq, hd)
        acc_scr[...] += jnp.dot(oh.astype(compute_dtype),
                                wo_ref[h * hd:(h + 1) * hd, :],
                                preferred_element_type=jnp.float32)        # (tq, d)

    # residual comes from the resident full-sequence block (no duplicate x input)
    x_q = x_ref[0, pl.ds(row0, tq), :].astype(jnp.float32)
    y = _layernorm(x_q + acc_scr[...], n1w_ref[...], n1b_ref[...], eps)    # post-norm 1

    # --- feed-forward (ReLU output kept only in compute_dtype) ---
    h1 = jnp.maximum(jnp.dot(y.astype(compute_dtype), w1_ref[...],
                             preferred_element_type=jnp.float32) + b1_ref[...],
                     0.0).astype(compute_dtype)
    ff = jnp.dot(h1, w2_ref[...],
                 preferred_element_type=jnp.float32) + b2_ref[...]

    out_ref[0] = _layernorm(y + ff, n2w_ref[...], n2b_ref[...],
                            eps).astype(out_ref.dtype)                     # post-norm 2


def _pick_q_tile(T, *, align, target=256):
    """Largest query-row tile <= target that divides T and is `align`-row aligned."""
    if T <= target:
        return T
    for cand in range(min(target, T), align - 1, -1):
        if T % cand == 0 and cand % align == 0:
            return cand
    return T


def _vmem_capacity_bytes():
    try:
        cap = getattr(pltpu.get_tpu_info(), "vmem_capacity_bytes", None)
        if cap:
            return int(cap)
    except Exception:
        pass
    return 64 << 20   # conservative fallback (v7x per-TensorCore)


def transformer_block(x, params, *, num_heads, eps=1e-5, compute_dtype=None):
    B, T, d = x.shape
    assert d % num_heads == 0
    hd = d // num_heads
    # Default to bf16 MXU compute (f32 accumulation); pass jnp.float32 for exact parity.
    cd = jnp.dtype(jnp.bfloat16) if compute_dtype is None else jnp.dtype(compute_dtype)
    d_ff = params["w1"].shape[1]

    # Fuse Q/K/V into one (d, 3d) weight; fold the 1/sqrt(hd) scale into wq/bq.
    scale = 1.0 / np.sqrt(hd)
    fused = {
        "wqkv": jnp.concatenate([params["wq"] * scale, params["wk"], params["wv"]],
                                axis=1).astype(cd),
        "bqkv": jnp.concatenate([params["bq"] * scale, params["bk"], params["bv"]],
                                axis=1).astype(jnp.float32),
        "wo": params["wo"].astype(cd),  "bo": params["bo"].astype(jnp.float32),
        "n1w": params["n1w"].astype(jnp.float32), "n1b": params["n1b"].astype(jnp.float32),
        "w1": params["w1"].astype(cd),  "b1": params["b1"].astype(jnp.float32),
        "w2": params["w2"].astype(cd),  "b2": params["b2"].astype(jnp.float32),
        "n2w": params["n2w"].astype(jnp.float32), "n2b": params["n2b"].astype(jnp.float32),
    }
    flat = [fused[k] for k in PARAM_ORDER]

    tq = _pick_q_tile(T, align=16 if cd.itemsize == 2 else 8)
    nq = T // tq

    kernel = functools.partial(transformer_block_kernel,
                               num_heads=num_heads, eps=eps, compute_dtype=cd)

    def weight_spec(shape):
        n = len(shape)
        return pl.BlockSpec(shape, lambda b, q, _n=n: (0,) * _n)

    in_specs = ([pl.BlockSpec((1, T, d), lambda b, q: (b, 0, 0))]   # full sequence
                + [weight_spec(a.shape) for a in flat])

    # VMEM budget: (double-buffered) weights + x/out blocks + scratch + live temps.
    def nbytes(a):
        return int(np.prod(a.shape)) * jnp.dtype(a.dtype).itemsize
    xb = jnp.dtype(x.dtype).itemsize
    need = (2 * sum(nbytes(a) for a in flat)        # weight blocks (double-buffered)
            + 2 * T * d * xb + 2 * tq * d * xb      # x / out blocks
            + T * 3 * d * cd.itemsize               # qkv scratch
            + tq * d * 4                            # acc scratch
            + tq * T * 4 + tq * 3 * d * 4           # score tile + projection temp
            + tq * d_ff * max(cd.itemsize, 4))      # ffn hidden temp
    cap = _vmem_capacity_bytes()
    vmem_limit = int(min(max(need + (8 << 20), 32 << 20), max(cap * 7 // 8, 32 << 20)))

    return pl.pallas_call(
        kernel,
        out_shape=jax.ShapeDtypeStruct((B, T, d), x.dtype),
        grid=(B, nq),
        in_specs=in_specs,
        out_specs=pl.BlockSpec((1, tq, d), lambda b, q: (b, q, 0)),
        scratch_shapes=[pltpu.VMEM((T, 3 * d), cd),         # fused Q|K|V of the sequence
                        pltpu.VMEM((tq, d), jnp.float32)],  # attention+wo accumulator
        compiler_params=pltpu.CompilerParams(
            dimension_semantics=("parallel", "arbitrary"),
            vmem_limit_bytes=vmem_limit),
    )(x, *flat)


def init_params(key, d, num_heads, d_ff):
    """Deterministic init matching the module's __init__ (randn * sqrt(2/in_dim))."""
    keys = jax.random.split(key, 6)

    def lin_w(k, in_dim, out_dim):
        return (jax.random.normal(k, (in_dim, out_dim), jnp.float32)
                * np.sqrt(2.0 / in_dim))

    return {
        "wq": lin_w(keys[0], d, d),      "bq": jnp.zeros((1, d), jnp.float32),
        "wk": lin_w(keys[1], d, d),      "bk": jnp.zeros((1, d), jnp.float32),
        "wv": lin_w(keys[2], d, d),      "bv": jnp.zeros((1, d), jnp.float32),
        "wo": lin_w(keys[3], d, d),      "bo": jnp.zeros((1, d), jnp.float32),
        "n1w": jnp.ones((1, d), jnp.float32), "n1b": jnp.zeros((1, d), jnp.float32),
        "w1": lin_w(keys[4], d, d_ff),   "b1": jnp.zeros((1, d_ff), jnp.float32),
        "w2": lin_w(keys[5], d_ff, d),   "b2": jnp.zeros((1, d), jnp.float32),
        "n2w": jnp.ones((1, d), jnp.float32), "n2b": jnp.zeros((1, d), jnp.float32),
    }


def reference_block(x, params, *, num_heads, eps=1e-5):
    """Pure-JAX reference reproducing the PyTorch forward (mask=None)."""
    B, T, d = x.shape
    hd = d // num_heads

    def lin(z, w, b):
        return z @ w + b

    def ln(z, w, b):
        mean = jnp.mean(z, -1, keepdims=True)
        var = jnp.var(z, -1, keepdims=True, ddof=1)   # torch.var default: unbiased
        return (z - mean) / jnp.sqrt(var + eps) * w + b

    q = lin(x, params["wq"], params["bq"]).reshape(B, T, num_heads, hd).transpose(0, 2, 1, 3)
    k = lin(x, params["wk"], params["bk"]).reshape(B, T, num_heads, hd).transpose(0, 2, 1, 3)
    v = lin(x, params["wv"], params["bv"]).reshape(B, T, num_heads, hd).transpose(0, 2, 1, 3)
    scores = jnp.einsum("bhqd,bhkd->bhqk", q, k) / np.sqrt(hd)
    a = jax.nn.softmax(scores, axis=-1)
    attn = jnp.einsum("bhqk,bhkd->bhqd", a, v).transpose(0, 2, 1, 3).reshape(B, T, d)
    attn = lin(attn, params["wo"], params["bo"])
    y = ln(x + attn, params["n1w"], params["n1b"])
    ff = lin(jnp.maximum(lin(y, params["w1"], params["b1"]), 0.0),
             params["w2"], params["b2"])
    return ln(y + ff, params["n2w"], params["n2b"])


if __name__ == "__main__":
    B, T, d, num_heads, d_ff = 2, 8, 32, 4, 64

    key = jax.random.PRNGKey(0)
    k_x, k_p = jax.random.split(key)
    x = jax.random.normal(k_x, (B, T, d), jnp.float32)
    params = init_params(k_p, d, num_heads, d_ff)

    ref = reference_block(x, params, num_heads=num_heads)

    # 1) exact-parity check: f32 MXU compute, exact softmax -> tight tolerance.
    out_f32 = jax.block_until_ready(
        transformer_block(x, params, num_heads=num_heads, compute_dtype=jnp.float32))
    np.testing.assert_allclose(np.asarray(out_f32), np.asarray(ref),
                               rtol=2e-3, atol=2e-3)

    # 2) default throughput path (bf16 MXU compute, f32 accumulation) -> loose sanity check.
    out_bf16 = jax.block_until_ready(
        transformer_block(x, params, num_heads=num_heads))
    np.testing.assert_allclose(np.asarray(out_bf16), np.asarray(ref),
                               rtol=5e-2, atol=5e-2)

    print("KERNEL_OK")
</pallas_src>

<mosaic_0001>
module attributes {stable_mosaic.version = 11 : i64} {
  func.func @transformer_block_kernel(%arg0: i32, %arg1: i32, %arg2: memref<1x8x32xf32, #tpu.memory_space<vmem>>, %arg3: memref<32x96xf32, #tpu.memory_space<vmem>>, %arg4: memref<1x96xf32, #tpu.memory_space<vmem>>, %arg5: memref<32x32xf32, #tpu.memory_space<vmem>>, %arg6: memref<1x32xf32, #tpu.memory_space<vmem>>, %arg7: memref<1x32xf32, #tpu.memory_space<vmem>>, %arg8: memref<1x32xf32, #tpu.memory_space<vmem>>, %arg9: memref<32x64xf32, #tpu.memory_space<vmem>>, %arg10: memref<1x64xf32, #tpu.memory_space<vmem>>, %arg11: memref<64x32xf32, #tpu.memory_space<vmem>>, %arg12: memref<1x32xf32, #tpu.memory_space<vmem>>, %arg13: memref<1x32xf32, #tpu.memory_space<vmem>>, %arg14: memref<1x32xf32, #tpu.memory_space<vmem>>, %arg15: memref<1x8x32xf32, #tpu.memory_space<vmem>>, %arg16: memref<8x96xf32, #tpu.memory_space<vmem>>, %arg17: memref<8x32xf32, #tpu.memory_space<vmem>>) attributes {dimension_semantics = [#tpu.dimension_semantics<parallel>, #tpu.dimension_semantics<arbitrary>], iteration_bounds = array<i64: 2, 1>, scalar_prefetch = 0 : i64, scratch_operands = 2 : i64, tpu.core_type = #tpu.core_type<tc>, window_params = [{transform_indices = @transform_0, window_bounds = array<i64: 1, 8, 32>}, {pipeline_mode = #tpu.pipeline_mode<synchronous>, transform_indices = @transform_1, window_bounds = array<i64: 32, 96>}, {pipeline_mode = #tpu.pipeline_mode<synchronous>, transform_indices = @transform_2, window_bounds = array<i64: 1, 96>}, {pipeline_mode = #tpu.pipeline_mode<synchronous>, transform_indices = @transform_3, window_bounds = array<i64: 32, 32>}, {pipeline_mode = #tpu.pipeline_mode<synchronous>, transform_indices = @transform_4, window_bounds = array<i64: 1, 32>}, {pipeline_mode = #tpu.pipeline_mode<synchronous>, transform_indices = @transform_5, window_bounds = array<i64: 1, 32>}, {pipeline_mode = #tpu.pipeline_mode<synchronous>, transform_indices = @transform_6, window_bounds = array<i64: 1, 32>}, {pipeline_mode = #tpu.pipeline_mode<synchronous>, transform_indices = @transform_7, window_bounds = array<i64: 32, 64>}, {pipeline_mode = #tpu.pipeline_mode<synchronous>, transform_indices = @transform_8, window_bounds = array<i64: 1, 64>}, {pipeline_mode = #tpu.pipeline_mode<synchronous>, transform_indices = @transform_9, window_bounds = array<i64: 64, 32>}, {pipeline_mode = #tpu.pipeline_mode<synchronous>, transform_indices = @transform_10, window_bounds = array<i64: 1, 32>}, {pipeline_mode = #tpu.pipeline_mode<synchronous>, transform_indices = @transform_11, window_bounds = array<i64: 1, 32>}, {pipeline_mode = #tpu.pipeline_mode<synchronous>, transform_indices = @transform_12, window_bounds = array<i64: 1, 32>}, {transform_indices = @transform_13, window_bounds = array<i64: 1, 8, 32>}]} {
    %c0_i32 = arith.constant 0 : i32
    %0 = arith.cmpi eq, %arg1, %c0_i32 : i32
    %1 = arith.extui %0 : i1 to i32
    %c0_i32_0 = arith.constant 0 : i32
    %2 = arith.cmpi ne, %1, %c0_i32_0 : i32
    scf.if %2 {
      %c0_i32_92 = arith.constant 0 : i32
      %c8_i32_93 = arith.constant 8 : i32
      %154 = arith.muli %c0_i32_92, %c8_i32_93 : i32
      %155 = tpu.assume_multiple %154, 8 : i32
      %c0_94 = arith.constant 0 : index
      %156 = arith.index_cast %155 : i32 to index
      %c0_95 = arith.constant 0 : index
      %157 = vector.load %arg2[%c0_94, %156, %c0_95] : memref<1x8x32xf32, #tpu.memory_space<vmem>>, vector<1x8x32xf32>
      %158 = vector.shape_cast %157 : vector<1x8x32xf32> to vector<8x32xf32>
      %c0_96 = arith.constant 0 : index
      %c0_97 = arith.constant 0 : index
      %159 = vector.load %arg3[%c0_96, %c0_97] : memref<32x96xf32, #tpu.memory_space<vmem>>, vector<32x96xf32>
      %cst_98 = arith.constant dense<0.000000e+00> : vector<8x96xf32>
      %160 = tpu.matmul %158, %159, %cst_98 {dimension_numbers = #tpu.dot_dimension_numbers<[1], [0], [0], [1], [0, 0, 1, 1], [], []>} : vector<8x32xf32>, vector<32x96xf32>, vector<8x96xf32> -> vector<8x96xf32>
      %c0_99 = arith.constant 0 : index
      %c0_100 = arith.constant 0 : index
      %161 = vector.load %arg4[%c0_99, %c0_100] : memref<1x96xf32, #tpu.memory_space<vmem>>, vector<1x96xf32>
      %162 = vector.broadcast %161 : vector<1x96xf32> to vector<8x96xf32>
      %163 = arith.addf %160, %162 : vector<8x96xf32>
      %164 = arith.index_cast %155 : i32 to index
      %c0_101 = arith.constant 0 : index
      %165 = vector.load %arg16[%164, %c0_101] : memref<8x96xf32, #tpu.memory_space<vmem>>, vector<8x96xf32>
      tpu.vector_store %arg16[%164, %c0_101], %163 {strides = array<i32>} : memref<8x96xf32, #tpu.memory_space<vmem>>, vector<8x96xf32>,
      %c1_i32 = arith.constant 1 : i32
    } else {
    }
    %c8_i32 = arith.constant 8 : i32
    %3 = arith.muli %arg1, %c8_i32 : i32
    %4 = tpu.assume_multiple %3, 8 : i32
    %c0 = arith.constant 0 : index
    %c0_1 = arith.constant 0 : index
    %5 = vector.load %arg6[%c0, %c0_1] : memref<1x32xf32, #tpu.memory_space<vmem>>, vector<1x32xf32>
    %6 = vector.shape_cast %5 : vector<1x32xf32> to vector<1x32xf32>
    %7 = vector.broadcast %6 : vector<1x32xf32> to vector<8x32xf32>
    %c0_2 = arith.constant 0 : index
    %c0_3 = arith.constant 0 : index
    %8 = vector.load %arg17[%c0_2, %c0_3] : memref<8x32xf32, #tpu.memory_space<vmem>>, vector<8x32xf32>
    tpu.vector_store %arg17[%c0_2, %c0_3], %7 {strides = array<i32>} : memref<8x32xf32, #tpu.memory_space<vmem>>, vector<8x32xf32>,
    %9 = arith.index_cast %4 : i32 to index
    %c0_4 = arith.constant 0 : index
    %10 = vector.load %arg16[%9, %c0_4] : memref<8x96xf32, #tpu.memory_space<vmem>>, vector<8x8xf32>
    %c0_5 = arith.constant 0 : index
    %c32 = arith.constant 32 : index
    %11 = vector.load %arg16[%c0_5, %c32] : memref<8x96xf32, #tpu.memory_space<vmem>>, vector<8x8xf32>
    %c0_6 = arith.constant 0 : index
    %c64 = arith.constant 64 : index
    %12 = vector.load %arg16[%c0_6, %c64] : memref<8x96xf32, #tpu.memory_space<vmem>>, vector<8x8xf32>
    %cst = arith.constant dense<0.000000e+00> : vector<8x8xf32>
    %13 = tpu.matmul %10, %11, %cst {dimension_numbers = #tpu.dot_dimension_numbers<[1], [1], [0], [0], [0, 0, 1, 0], [], []>} : vector<8x8xf32>, vector<8x8xf32>, vector<8x8xf32> -> vector<8x8xf32>
    %cst_7 = arith.constant dense<0xFF800000> : vector<8xf32>
    %14 = vector.multi_reduction <maximumf>, %13, %cst_7 [1] : vector<8x8xf32> to vector<8xf32>
    %15 = vector.shape_cast %14 : vector<8xf32> to vector<8x1xf32>
    %16 = vector.broadcast %15 : vector<8x1xf32> to vector<8x8xf32>
    %17 = arith.subf %13, %16 : vector<8x8xf32>
    %18 = math.exp %17 : vector<8x8xf32>
    %cst_8 = arith.constant dense<0.000000e+00> : vector<8xf32>
    %19 = vector.multi_reduction <add>, %18, %cst_8 [1] : vector<8x8xf32> to vector<8xf32>
    %20 = vector.shape_cast %19 : vector<8xf32> to vector<8x1xf32>
    %21 = vector.broadcast %20 : vector<8x1xf32> to vector<8x8xf32>
    %22 = arith.divf %18, %21 : vector<8x8xf32>
    %cst_9 = arith.constant dense<0.000000e+00> : vector<8x8xf32>
    %23 = tpu.matmul %22, %12, %cst_9 {dimension_numbers = #tpu.dot_dimension_numbers<[1], [0], [0], [1], [0, 0, 1, 1], [], []>} : vector<8x8xf32>, vector<8x8xf32>, vector<8x8xf32> -> vector<8x8xf32>
    %c0_10 = arith.constant 0 : index
    %c0_11 = arith.constant 0 : index
    %24 = vector.load %arg17[%c0_10, %c0_11] : memref<8x32xf32, #tpu.memory_space<vmem>>, vector<8x32xf32>
    %c0_12 = arith.constant 0 : index
    %c0_13 = arith.constant 0 : index
    %25 = vector.load %arg5[%c0_12, %c0_13] : memref<32x32xf32, #tpu.memory_space<vmem>>, vector<8x32xf32>
    %cst_14 = arith.constant dense<0.000000e+00> : vector<8x32xf32>
    %26 = tpu.matmul %23, %25, %cst_14 {dimension_numbers = #tpu.dot_dimension_numbers<[1], [0], [0], [1], [0, 0, 1, 1], [], []>} : vector<8x8xf32>, vector<8x32xf32>, vector<8x32xf32> -> vector<8x32xf32>
    %27 = arith.addf %24, %26 : vector<8x32xf32>
    %c0_15 = arith.constant 0 : index
    %c0_16 = arith.constant 0 : index
    %28 = vector.load %arg17[%c0_15, %c0_16] : memref<8x32xf32, #tpu.memory_space<vmem>>, vector<8x32xf32>
    tpu.vector_store %arg17[%c0_15, %c0_16], %27 {strides = array<i32>} : memref<8x32xf32, #tpu.memory_space<vmem>>, vector<8x32xf32>,
    %29 = arith.index_cast %4 : i32 to index
    %c8 = arith.constant 8 : index
    %30 = vector.load %arg16[%29, %c8] : memref<8x96xf32, #tpu.memory_space<vmem>>, vector<8x8xf32>
    %c0_17 = arith.constant 0 : index
    %c40 = arith.constant 40 : index
    %31 = vector.load %arg16[%c0_17, %c40] : memref<8x96xf32, #tpu.memory_space<vmem>>, vector<8x8xf32>
    %c0_18 = arith.constant 0 : index
    %c72 = arith.constant 72 : index
    %32 = vector.load %arg16[%c0_18, %c72] : memref<8x96xf32, #tpu.memory_space<vmem>>, vector<8x8xf32>
    %cst_19 = arith.constant dense<0.000000e+00> : vector<8x8xf32>
    %33 = tpu.matmul %30, %31, %cst_19 {dimension_numbers = #tpu.dot_dimension_numbers<[1], [1], [0], [0], [0, 0, 1, 0], [], []>} : vector<8x8xf32>, vector<8x8xf32>, vector<8x8xf32> -> vector<8x8xf32>
    %cst_20 = arith.constant dense<0xFF800000> : vector<8xf32>
    %34 = vector.multi_reduction <maximumf>, %33, %cst_20 [1] : vector<8x8xf32> to vector<8xf32>
    %35 = vector.shape_cast %34 : vector<8xf32> to vector<8x1xf32>
    %36 = vector.broadcast %35 : vector<8x1xf32> to vector<8x8xf32>
    %37 = arith.subf %33, %36 : vector<8x8xf32>
    %38 = math.exp %37 : vector<8x8xf32>
    %cst_21 = arith.constant dense<0.000000e+00> : vector<8xf32>
    %39 = vector.multi_reduction <add>, %38, %cst_21 [1] : vector<8x8xf32> to vector<8xf32>
    %40 = vector.shape_cast %39 : vector<8xf32> to vector<8x1xf32>
    %41 = vector.broadcast %40 : vector<8x1xf32> to vector<8x8xf32>
    %42 = arith.divf %38, %41 : vector<8x8xf32>
    %cst_22 = arith.constant dense<0.000000e+00> : vector<8x8xf32>
    %43 = tpu.matmul %42, %32, %cst_22 {dimension_numbers = #tpu.dot_dimension_numbers<[1], [0], [0], [1], [0, 0, 1, 1], [], []>} : vector<8x8xf32>, vector<8x8xf32>, vector<8x8xf32> -> vector<8x8xf32>
    %c0_23 = arith.constant 0 : index
    %c0_24 = arith.constant 0 : index
    %44 = vector.load %arg17[%c0_23, %c0_24] : memref<8x32xf32, #tpu.memory_space<vmem>>, vector<8x32xf32>
    %c8_25 = arith.constant 8 : index
    %c0_26 = arith.constant 0 : index
    %45 = vector.load %arg5[%c8_25, %c0_26] : memref<32x32xf32, #tpu.memory_space<vmem>>, vector<8x32xf32>
    %cst_27 = arith.constant dense<0.000000e+00> : vector<8x32xf32>
    %46 = tpu.matmul %43, %45, %cst_27 {dimension_numbers = #tpu.dot_dimension_numbers<[1], [0], [0], [1], [0, 0, 1, 1], [], []>} : vector<8x8xf32>, vector<8x32xf32>, vector<8x32xf32> -> vector<8x32xf32>
    %47 = arith.addf %44, %46 : vector<8x32xf32>
    %c0_28 = arith.constant 0 : index
    %c0_29 = arith.constant 0 : index
    %48 = vector.load %arg17[%c0_28, %c0_29] : memref<8x32xf32, #tpu.memory_space<vmem>>, vector<8x32xf32>
    tpu.vector_store %arg17[%c0_28, %c0_29], %47 {strides = array<i32>} : memref<8x32xf32, #tpu.memory_space<vmem>>, vector<8x32xf32>,
    %49 = arith.index_cast %4 : i32 to index
    %c16 = arith.constant 16 : index
    %50 = vector.load %arg16[%49, %c16] : memref<8x96xf32, #tpu.memory_space<vmem>>, vector<8x8xf32>
    %c0_30 = arith.constant 0 : index
    %c48 = arith.constant 48 : index
    %51 = vector.load %arg16[%c0_30, %c48] : memref<8x96xf32, #tpu.memory_space<vmem>>, vector<8x8xf32>
    %c0_31 = arith.constant 0 : index
    %c80 = arith.constant 80 : index
    %52 = vector.load %arg16[%c0_31, %c80] : memref<8x96xf32, #tpu.memory_space<vmem>>, vector<8x8xf32>
    %cst_32 = arith.constant dense<0.000000e+00> : vector<8x8xf32>
    %53 = tpu.matmul %50, %51, %cst_32 {dimension_numbers = #tpu.dot_dimension_numbers<[1], [1], [0], [0], [0, 0, 1, 0], [], []>} : vector<8x8xf32>, vector<8x8xf32>, vector<8x8xf32> -> vector<8x8xf32>
    %cst_33 = arith.constant dense<0xFF800000> : vector<8xf32>
    %54 = vector.multi_reduction <maximumf>, %53, %cst_33 [1] : vector<8x8xf32> to vector<8xf32>
    %55 = vector.shape_cast %54 : vector<8xf32> to vector<8x1xf32>
    %56 = vector.broadcast %55 : vector<8x1xf32> to vector<8x8xf32>
    %57 = arith.subf %53, %56 : vector<8x8xf32>
    %58 = math.exp %57 : vector<8x8xf32>
    %cst_34 = arith.constant dense<0.000000e+00> : vector<8xf32>
    %59 = vector.multi_reduction <add>, %58, %cst_34 [1] : vector<8x8xf32> to vector<8xf32>
    %60 = vector.shape_cast %59 : vector<8xf32> to vector<8x1xf32>
    %61 = vector.broadcast %60 : vector<8x1xf32> to vector<8x8xf32>
    %62 = arith.divf %58, %61 : vector<8x8xf32>
    %cst_35 = arith.constant dense<0.000000e+00> : vector<8x8xf32>
    %63 = tpu.matmul %62, %52, %cst_35 {dimension_numbers = #tpu.dot_dimension_numbers<[1], [0], [0], [1], [0, 0, 1, 1], [], []>} : vector<8x8xf32>, vector<8x8xf32>, vector<8x8xf32> -> vector<8x8xf32>
    %c0_36 = arith.constant 0 : index
    %c0_37 = arith.constant 0 : index
    %64 = vector.load %arg17[%c0_36, %c0_37] : memref<8x32xf32, #tpu.memory_space<vmem>>, vector<8x32xf32>
    %c16_38 = arith.constant 16 : index
    %c0_39 = arith.constant 0 : index
    %65 = vector.load %arg5[%c16_38, %c0_39] : memref<32x32xf32, #tpu.memory_space<vmem>>, vector<8x32xf32>
    %cst_40 = arith.constant dense<0.000000e+00> : vector<8x32xf32>
    %66 = tpu.matmul %63, %65, %cst_40 {dimension_numbers = #tpu.dot_dimension_numbers<[1], [0], [0], [1], [0, 0, 1, 1], [], []>} : vector<8x8xf32>, vector<8x32xf32>, vector<8x32xf32> -> vector<8x32xf32>
    %67 = arith.addf %64, %66 : vector<8x32xf32>
    %c0_41 = arith.constant 0 : index
    %c0_42 = arith.constant 0 : index
    %68 = vector.load %arg17[%c0_41, %c0_42] : memref<8x32xf32, #tpu.memory_space<vmem>>, vector<8x32xf32>
    tpu.vector_store %arg17[%c0_41, %c0_42], %67 {strides = array<i32>} : memref<8x32xf32, #tpu.memory_space<vmem>>, vector<8x32xf32>,
    %69 = arith.index_cast %4 : i32 to index
    %c24 = arith.constant 24 : index
    %70 = vector.load %arg16[%69, %c24] : memref<8x96xf32, #tpu.memory_space<vmem>>, vector<8x8xf32>
    %c0_43 = arith.constant 0 : index
    %c56 = arith.constant 56 : index
    %71 = vector.load %arg16[%c0_43, %c56] : memref<8x96xf32, #tpu.memory_space<vmem>>, vector<8x8xf32>
    %c0_44 = arith.constant 0 : index
    %c88 = arith.constant 88 : index
    %72 = vector.load %arg16[%c0_44, %c88] : memref<8x96xf32, #tpu.memory_space<vmem>>, vector<8x8xf32>
    %cst_45 = arith.constant dense<0.000000e+00> : vector<8x8xf32>
    %73 = tpu.matmul %70, %71, %cst_45 {dimension_numbers = #tpu.dot_dimension_numbers<[1], [1], [0], [0], [0, 0, 1, 0], [], []>} : vector<8x8xf32>, vector<8x8xf32>, vector<8x8xf32> -> vector<8x8xf32>
    %cst_46 = arith.constant dense<0xFF800000> : vector<8xf32>
    %74 = vector.multi_reduction <maximumf>, %73, %cst_46 [1] : vector<8x8xf32> to vector<8xf32>
    %75 = vector.shape_cast %74 : vector<8xf32> to vector<8x1xf32>
    %76 = vector.broadcast %75 : vector<8x1xf32> to vector<8x8xf32>
    %77 = arith.subf %73, %76 : vector<8x8xf32>
    %78 = math.exp %77 : vector<8x8xf32>
    %cst_47 = arith.constant dense<0.000000e+00> : vector<8xf32>
    %79 = vector.multi_reduction <add>, %78, %cst_47 [1] : vector<8x8xf32> to vector<8xf32>
    %80 = vector.shape_cast %79 : vector<8xf32> to vector<8x1xf32>
    %81 = vector.broadcast %80 : vector<8x1xf32> to vector<8x8xf32>
    %82 = arith.divf %78, %81 : vector<8x8xf32>
    %cst_48 = arith.constant dense<0.000000e+00> : vector<8x8xf32>
    %83 = tpu.matmul %82, %72, %cst_48 {dimension_numbers = #tpu.dot_dimension_numbers<[1], [0], [0], [1], [0, 0, 1, 1], [], []>} : vector<8x8xf32>, vector<8x8xf32>, vector<8x8xf32> -> vector<8x8xf32>
    %c0_49 = arith.constant 0 : index
    %c0_50 = arith.constant 0 : index
    %84 = vector.load %arg17[%c0_49, %c0_50] : memref<8x32xf32, #tpu.memory_space<vmem>>, vector<8x32xf32>
    %c24_51 = arith.constant 24 : index
    %c0_52 = arith.constant 0 : index
    %85 = vector.load %arg5[%c24_51, %c0_52] : memref<32x32xf32, #tpu.memory_space<vmem>>, vector<8x32xf32>
    %cst_53 = arith.constant dense<0.000000e+00> : vector<8x32xf32>
    %86 = tpu.matmul %83, %85, %cst_53 {dimension_numbers = #tpu.dot_dimension_numbers<[1], [0], [0], [1], [0, 0, 1, 1], [], []>} : vector<8x8xf32>, vector<8x32xf32>, vector<8x32xf32> -> vector<8x32xf32>
    %87 = arith.addf %84, %86 : vector<8x32xf32>
    %c0_54 = arith.constant 0 : index
    %c0_55 = arith.constant 0 : index
    %88 = vector.load %arg17[%c0_54, %c0_55] : memref<8x32xf32, #tpu.memory_space<vmem>>, vector<8x32xf32>
    tpu.vector_store %arg17[%c0_54, %c0_55], %87 {strides = array<i32>} : memref<8x32xf32, #tpu.memory_space<vmem>>, vector<8x32xf32>,
    %c0_56 = arith.constant 0 : index
    %89 = arith.index_cast %4 : i32 to index
    %c0_57 = arith.constant 0 : index
    %90 = vector.load %arg2[%c0_56, %89, %c0_57] : memref<1x8x32xf32, #tpu.memory_space<vmem>>, vector<1x8x32xf32>
    %91 = vector.shape_cast %90 : vector<1x8x32xf32> to vector<8x32xf32>
    %c0_58 = arith.constant 0 : index
    %c0_59 = arith.constant 0 : index
    %92 = vector.load %arg17[%c0_58, %c0_59] : memref<8x32xf32, #tpu.memory_space<vmem>>, vector<8x32xf32>
    %93 = arith.addf %91, %92 : vector<8x32xf32>
    %c0_60 = arith.constant 0 : index
    %c0_61 = arith.constant 0 : index
    %94 = vector.load %arg7[%c0_60, %c0_61] : memref<1x32xf32, #tpu.memory_space<vmem>>, vector<1x32xf32>
    %c0_62 = arith.constant 0 : index
    %c0_63 = arith.constant 0 : index
    %95 = vector.load %arg8[%c0_62, %c0_63] : memref<1x32xf32, #tpu.memory_space<vmem>>, vector<1x32xf32>
    %cst_64 = arith.constant dense<0.000000e+00> : vector<8xf32>
    %96 = vector.multi_reduction <add>, %93, %cst_64 [1] : vector<8x32xf32> to vector<8xf32>
    %97 = vector.shape_cast %96 : vector<8xf32> to vector<8x1xf32>
    %cst_65 = arith.constant 3.200000e+01 : f32
    %98 = vector.broadcast %cst_65 : f32 to vector<8x1xf32>
    %99 = arith.divf %97, %98 : vector<8x1xf32>
    %100 = vector.broadcast %99 : vector<8x1xf32> to vector<8x32xf32>
    %101 = arith.subf %93, %100 : vector<8x32xf32>
    %102 = arith.mulf %101, %101 : vector<8x32xf32>
    %cst_66 = arith.constant dense<0.000000e+00> : vector<8xf32>
    %103 = vector.multi_reduction <add>, %102, %cst_66 [1] : vector<8x32xf32> to vector<8xf32>
    %104 = vector.shape_cast %103 : vector<8xf32> to vector<8x1xf32>
    %cst_67 = arith.constant 0.0322580636 : f32
    %105 = vector.broadcast %cst_67 : f32 to vector<8x1xf32>
    %106 = arith.mulf %104, %105 : vector<8x1xf32>
    %cst_68 = arith.constant 9.99999974E-6 : f32
    %107 = vector.broadcast %cst_68 : f32 to vector<8x1xf32>
    %108 = arith.addf %106, %107 : vector<8x1xf32>
    %109 = math.rsqrt %108 : vector<8x1xf32>
    %110 = vector.broadcast %109 : vector<8x1xf32> to vector<8x32xf32>
    %111 = arith.mulf %101, %110 : vector<8x32xf32>
    %112 = vector.broadcast %94 : vector<1x32xf32> to vector<8x32xf32>
    %113 = arith.mulf %111, %112 : vector<8x32xf32>
    %114 = vector.broadcast %95 : vector<1x32xf32> to vector<8x32xf32>
    %115 = arith.addf %113, %114 : vector<8x32xf32>
    %c0_69 = arith.constant 0 : index
    %c0_70 = arith.constant 0 : index
    %116 = vector.load %arg9[%c0_69, %c0_70] : memref<32x64xf32, #tpu.memory_space<vmem>>, vector<32x64xf32>
    %cst_71 = arith.constant dense<0.000000e+00> : vector<8x64xf32>
    %117 = tpu.matmul %115, %116, %cst_71 {dimension_numbers = #tpu.dot_dimension_numbers<[1], [0], [0], [1], [0, 0, 1, 1], [], []>} : vector<8x32xf32>, vector<32x64xf32>, vector<8x64xf32> -> vector<8x64xf32>
    %c0_72 = arith.constant 0 : index
    %c0_73 = arith.constant 0 : index
    %118 = vector.load %arg10[%c0_72, %c0_73] : memref<1x64xf32, #tpu.memory_space<vmem>>, vector<1x64xf32>
    %119 = vector.broadcast %118 : vector<1x64xf32> to vector<8x64xf32>
    %120 = arith.addf %117, %119 : vector<8x64xf32>
    %cst_74 = arith.constant 0.000000e+00 : f32
    %121 = vector.broadcast %cst_74 : f32 to vector<8x64xf32>
    %122 = arith.maximumf %120, %121 : vector<8x64xf32>
    %c0_75 = arith.constant 0 : index
    %c0_76 = arith.constant 0 : index
    %123 = vector.load %arg11[%c0_75, %c0_76] : memref<64x32xf32, #tpu.memory_space<vmem>>, vector<64x32xf32>
    %cst_77 = arith.constant dense<0.000000e+00> : vector<8x32xf32>
    %124 = tpu.matmul %122, %123, %cst_77 {dimension_numbers = #tpu.dot_dimension_numbers<[1], [0], [0], [1], [0, 0, 1, 1], [], []>} : vector<8x64xf32>, vector<64x32xf32>, vector<8x32xf32> -> vector<8x32xf32>
    %c0_78 = arith.constant 0 : index
    %c0_79 = arith.constant 0 : index
    %125 = vector.load %arg12[%c0_78, %c0_79] : memref<1x32xf32, #tpu.memory_space<vmem>>, vector<1x32xf32>
    %126 = vector.broadcast %125 : vector<1x32xf32> to vector<8x32xf32>
    %127 = arith.addf %124, %126 : vector<8x32xf32>
    %128 = arith.addf %115, %127 : vector<8x32xf32>
    %c0_80 = arith.constant 0 : index
    %c0_81 = arith.constant 0 : index
    %129 = vector.load %arg13[%c0_80, %c0_81] : memref<1x32xf32, #tpu.memory_space<vmem>>, vector<1x32xf32>
    %c0_82 = arith.constant 0 : index
    %c0_83 = arith.constant 0 : index
    %130 = vector.load %arg14[%c0_82, %c0_83] : memref<1x32xf32, #tpu.memory_space<vmem>>, vector<1x32xf32>
    %cst_84 = arith.constant dense<0.000000e+00> : vector<8xf32>
    %131 = vector.multi_reduction <add>, %128, %cst_84 [1] : vector<8x32xf32> to vector<8xf32>
    %132 = vector.shape_cast %131 : vector<8xf32> to vector<8x1xf32>
    %cst_85 = arith.constant 3.200000e+01 : f32
    %133 = vector.broadcast %cst_85 : f32 to vector<8x1xf32>
    %134 = arith.divf %132, %133 : vector<8x1xf32>
    %135 = vector.broadcast %134 : vector<8x1xf32> to vector<8x32xf32>
    %136 = arith.subf %128, %135 : vector<8x32xf32>
    %137 = arith.mulf %136, %136 : vector<8x32xf32>
    %cst_86 = arith.constant dense<0.000000e+00> : vector<8xf32>
    %138 = vector.multi_reduction <add>, %137, %cst_86 [1] : vector<8x32xf32> to vector<8xf32>
    %139 = vector.shape_cast %138 : vector<8xf32> to vector<8x1xf32>
    %cst_87 = arith.constant 0.0322580636 : f32
    %140 = vector.broadcast %cst_87 : f32 to vector<8x1xf32>
    %141 = arith.mulf %139, %140 : vector<8x1xf32>
    %cst_88 = arith.constant 9.99999974E-6 : f32
    %142 = vector.broadcast %cst_88 : f32 to vector<8x1xf32>
    %143 = arith.addf %141, %142 : vector<8x1xf32>
    %144 = math.rsqrt %143 : vector<8x1xf32>
    %145 = vector.broadcast %144 : vector<8x1xf32> to vector<8x32xf32>
    %146 = arith.mulf %136, %145 : vector<8x32xf32>
    %147 = vector.broadcast %129 : vector<1x32xf32> to vector<8x32xf32>
    %148 = arith.mulf %146, %147 : vector<8x32xf32>
    %149 = vector.broadcast %130 : vector<1x32xf32> to vector<8x32xf32>
    %150 = arith.addf %148, %149 : vector<8x32xf32>
    %c0_89 = arith.constant 0 : index
    %c0_90 = arith.constant 0 : index
    %c0_91 = arith.constant 0 : index
    %151 = vector.load %arg15[%c0_89, %c0_90, %c0_91] : memref<1x8x32xf32, #tpu.memory_space<vmem>>, vector<1x8x32xf32>
    %152 = vector.shape_cast %151 : vector<1x8x32xf32> to vector<8x32xf32>
    %153 = vector.shape_cast %150 : vector<8x32xf32> to vector<1x8x32xf32>
    tpu.vector_store %arg15[%c0_89, %c0_90, %c0_91], %153 {strides = array<i32>} : memref<1x8x32xf32, #tpu.memory_space<vmem>>, vector<1x8x32xf32>,
    return
  }
  func.func @transform_0(%arg0: i32, %arg1: i32) -> (i32, i32, i32) {
    %c0_i32 = arith.constant 0 : i32
    %c0_i32_0 = arith.constant 0 : i32
    %c0_i32_1 = arith.constant 0 : i32
    return %arg0, %c0_i32, %c0_i32_0 : i32, i32, i32
  }
  func.func @transform_1(%arg0: i32, %arg1: i32) -> (i32, i32) {
    %c0_i32 = arith.constant 0 : i32
    %c0_i32_0 = arith.constant 0 : i32
    %c0_i32_1 = arith.constant 0 : i32
    return %c0_i32, %c0_i32_0 : i32, i32
  }
  func.func @transform_2(%arg0: i32, %arg1: i32) -> (i32, i32) {
    %c0_i32 = arith.constant 0 : i32
    %c0_i32_0 = arith.constant 0 : i32
    %c0_i32_1 = arith.constant 0 : i32
    return %c0_i32, %c0_i32_0 : i32, i32
  }
  func.func @transform_3(%arg0: i32, %arg1: i32) -> (i32, i32) {
    %c0_i32 = arith.constant 0 : i32
    %c0_i32_0 = arith.constant 0 : i32
    %c0_i32_1 = arith.constant 0 : i32
    return %c0_i32, %c0_i32_0 : i32, i32
  }
  func.func @transform_4(%arg0: i32, %arg1: i32) -> (i32, i32) {
    %c0_i32 = arith.constant 0 : i32
    %c0_i32_0 = arith.constant 0 : i32
    %c0_i32_1 = arith.constant 0 : i32
    return %c0_i32, %c0_i32_0 : i32, i32
  }
  func.func @transform_5(%arg0: i32, %arg1: i32) -> (i32, i32) {
    %c0_i32 = arith.constant 0 : i32
    %c0_i32_0 = arith.constant 0 : i32
    %c0_i32_1 = arith.constant 0 : i32
    return %c0_i32, %c0_i32_0 : i32, i32
  }
  func.func @transform_6(%arg0: i32, %arg1: i32) -> (i32, i32) {
    %c0_i32 = arith.constant 0 : i32
    %c0_i32_0 = arith.constant 0 : i32
    %c0_i32_1 = arith.constant 0 : i32
    return %c0_i32, %c0_i32_0 : i32, i32
  }
  func.func @transform_7(%arg0: i32, %arg1: i32) -> (i32, i32) {
    %c0_i32 = arith.constant 0 : i32
    %c0_i32_0 = arith.constant 0 : i32
    %c0_i32_1 = arith.constant 0 : i32
    return %c0_i32, %c0_i32_0 : i32, i32
  }
  func.func @transform_8(%arg0: i32, %arg1: i32) -> (i32, i32) {
    %c0_i32 = arith.constant 0 : i32
    %c0_i32_0 = arith.constant 0 : i32
    %c0_i32_1 = arith.constant 0 : i32
    return %c0_i32, %c0_i32_0 : i32, i32
  }
  func.func @transform_9(%arg0: i32, %arg1: i32) -> (i32, i32) {
    %c0_i32 = arith.constant 0 : i32
    %c0_i32_0 = arith.constant 0 : i32
    %c0_i32_1 = arith.constant 0 : i32
    return %c0_i32, %c0_i32_0 : i32, i32
  }
  func.func @transform_10(%arg0: i32, %arg1: i32) -> (i32, i32) {
    %c0_i32 = arith.constant 0 : i32
    %c0_i32_0 = arith.constant 0 : i32
    %c0_i32_1 = arith.constant 0 : i32
    return %c0_i32, %c0_i32_0 : i32, i32
  }
  func.func @transform_11(%arg0: i32, %arg1: i32) -> (i32, i32) {
    %c0_i32 = arith.constant 0 : i32
    %c0_i32_0 = arith.constant 0 : i32
    %c0_i32_1 = arith.constant 0 : i32
    return %c0_i32, %c0_i32_0 : i32, i32
  }
  func.func @transform_12(%arg0: i32, %arg1: i32) -> (i32, i32) {
    %c0_i32 = arith.constant 0 : i32
    %c0_i32_0 = arith.constant 0 : i32
    %c0_i32_1 = arith.constant 0 : i32
    return %c0_i32, %c0_i32_0 : i32, i32
  }
  func.func @transform_13(%arg0: i32, %arg1: i32) -> (i32, i32, i32) {
    %c0_i32 = arith.constant 0 : i32
    %c0_i32_0 = arith.constant 0 : i32
    return %arg0, %arg1, %c0_i32 : i32, i32, i32
  }
}

</mosaic_0001>

<bundles_post_ra>
// kernel: tpu_custom_call.1
= control target key start
LH: loop header
LB: loop body
LE: loop exit
PB: predicated region body
PF: predicated region fallthrough
CT: control target
= control target key end

     0   :  { %s1797_s0 = inlined_call_operand.hbm [shape: f32[2,8,32], index: 0, kind: input, shape index: {}]   ;;  %s1798_s1 = inlined_call_operand.vmem [shape: f32[32,96], index: 1, kind: input, shape index: {}]   ;;  %s1799_s2 = inlined_call_operand.vmem [shape: f32[1,96], index: 2, kind: input, shape index: {}]   ;;  %s1800_s3 = inlined_call_operand.vmem [shape: f32[32,32], index: 3, kind: input, shape index: {}]   ;;  %s1801_s4 = inlined_call_operand.vmem [shape: f32[1,32], index: 4, kind: input, shape index: {}]   ;;  %s1802_s5 = inlined_call_operand.vmem [shape: f32[1,32], index: 5, kind: input, shape index: {}]   ;;  %s1803_s6 = inlined_call_operand.vmem [shape: f32[1,32], index: 6, kind: input, shape index: {}]   ;;  %s1804_s7 = inlined_call_operand.vmem [shape: f32[32,64], index: 7, kind: input, shape index: {}]   ;;  %s1805_s8 = inlined_call_operand.vmem [shape: f32[1,64], index: 8, kind: input, shape index: {}]   ;;  %s1806_s9 = inlined_call_operand.vmem [shape: f32[64,32], index: 9, kind: input, shape index: {}]   ;;  %s1807_s10 = inlined_call_operand.vmem [shape: f32[1,32], index: 10, kind: input, shape index: {}]   ;;  %s1808_s11 = inlined_call_operand.vmem [shape: f32[1,32], index: 11, kind: input, shape index: {}]   ;;  %s1809_s12 = inlined_call_operand.vmem [shape: f32[1,32], index: 12, kind: input, shape index: {}]   ;;  %s1810_s13 = inlined_call_operand.hbm [shape: f32[2,8,32], index: 13, kind: output, shape index: {}]  }
   0x1   :  { %1817 = sst [smem:[#allocation13_spill]] %s1797_s0 }
   0x2   :  { %1818 = sst [smem:[#allocation14_spill]] %s1798_s1 }
   0x3   :  { %1819 = sst [smem:[#allocation15_spill]] %s1799_s2 }
   0x4   :  { %1820 = sst [smem:[#allocation16_spill]] %s1808_s11 }
   0x5   :  { %1821 = sst [smem:[#allocation17_spill]] %s1809_s12 }
   0x6   :  { %1822 = sst [smem:[#allocation18_spill]] %s1810_s13 }
   0x7   :  { %18 = vsyncpa [#allocation5], 0 }
   0x8   :  { %20 = vsyncpa [#allocation5 + $0x1], 0 }
   0x9   :  { %21 = vsyncpa [#allocation6], 0 }
   0xa   :  { %23 = vsyncpa [#allocation6 + $0x1], 0  ;;  %s1531_s25 = smov 0   ;;  %s1533_s26 = smov 0  }
   0xb   :  { %s1535_s27 = smov 0   ;;  %s1537_s28 = smov 0  }
   0xc   :  { %s1539_s29 = smov 0   ;;  %s1541_s30 = smov 0  }
   0xd LB: > { %1823 = sst [smem:[#allocation10_spill]] %s1427_s25  ;;  %s1199_s14 = sadd.s32 4294967295, %s1447_s30   ;;  %s1447_s30 = sphi %s1541_s30, %s29_s30   ;;  %s1443_s29 = sphi %s1539_s29, %s1844_s29   ;;  %s1439_s28 = sphi %s1537_s28, %s1843_s28   ;;  %s1435_s27 = sphi %s1535_s27, %s1842_s27   ;;  %s1431_s26 = sphi %s1533_s26, %s1841_s26   ;;  %s1427_s25 = sphi %s1531_s25, %s1840_s25  }
   0xe   : > { %s1200_s15 = sadd.s32 4294967294, %s1447_s30   ;;  %s41_s16 = sadd.s32 1, %s1443_s29 }
   0xf   : > { %s48_s17 = sadd.s32 1, %s1435_s27  ;;  %p43_p0 = scmp.ge.s32.totalorder %s41_s16, 2 }
  0x10   : > { %p55_p1 = scmp.ne.s32.totalorder %s1435_s27, %s1431_s26  ;;  %p56_p2 = scmp.eq.s32.totalorder %s1447_s30, 0 }
  0x11   : > { %p61_p3 = scmp.ne.s32.totalorder %s1431_s26, %s1427_s25  ;;  %s1846_s16 = smov (%p43_p0, %s41_s16), 0 }
  0x12   : > { %1824 = sst [smem:[#allocation11_spill]] %s1846_s16  ;;  %p1572_p4 = por %p56_p2, %p55_p1 }
  0x13   : > { %p62_p5 = scmp.eq.s32.totalorder %s1199_s14, 0  ;;  %s45_s19 = ssub.s32 %s1443_s29, %s1846_s16 }
  0x14   : > { %p339_p6 = scmp.eq.s32.totalorder %s1199_s14, 1  ;;  %p46_p7 = scmp.eq.s32.totalorder %s45_s19, 0 }
  0x15   : > { %p1578_p8 = por %p62_p5, %p61_p3  ;;  %p345_p10 = scmp.eq.s32.totalorder %s1200_s15, 1 }
  0x16   : > { %p1582_p9 = por %p339_p6, %p55_p1  ;;  %p1202_p12 = scmp.ge.s32.totalorder %s1447_s30, 2 }
  0x17   : > { %s1587_s22 = scalar_select %p46_p7, %s1435_s27, %s48_s17  }
  0x18   : > { %s1827_s21 = scalar_select %p1582_p9, 1, 0 }
  0x19   : > { %p1589_p11 = por %p345_p10, %p61_p3  ;;  %p1243_p13 = scmp.lt.s32.totalorder %s1447_s30, 2 }
  0x1a   : > { %1828 = sst [smem:[#allocation12_spill]] %s1827_s21  ;;  %s401_s24 = sand.u32 1, %s1435_s27  }
  0x1b   : > { %s1203_s14 = sshll.u32 %s401_s24, 3  ;;  %s1204_s19 = sshll.u32 %s1443_s29, 3 }
  0x1c   : > { %s1830_s0 = sld [smem:[#allocation13_spill]]  ;;  %s405_s13 = scalar_lea.vmem [#allocation4], %s1203_s14 }
  0x1d   : > { %s413_s21 = sshll.u32 %s405_s13, 4  ;;  %p1236_p0 = pnand %p1243_p13, %p1572_p4  ;;  %s414_s21 = int_to_ptr.vmem [resolvable:$true] %s413_s21 }
  0x1e   : > { %p1205_p1 = scmp.ge.s32.totalorder %s1447_s30, 1  ;;  %p418_p2 = scmp.lt.s32.totalorder %s1447_s30, 3 }
  0x1f   : > { %s402_s15 = scalar_lea.sflag [#allocation5], %s401_s24 }
  0x20   : > { %p419_p3 = pnand %p1205_p1, %p418_p2 }
  0x21   : > { %s1605_s17 = sand.u32 (!%p419_p3), 1, %s1431_s26  }
  0x22   : > { %s409_s12 = scalar_lea.hbm %s1830_s0, %s1204_s19  ;;  %422 = sbr.rel (%p419_p3) target bundleno = 2713 (0xa99), region = 72 }
  0x23   : > { %s411_s11 = sshll.u32 %s409_s12, 4  ;;  %s1816_s25 = sshll.u32 (!%p419_p3), %s1605_s17, 3  ;;  %s412_s11 = int_to_ptr.hbm [resolvable:$true] %s411_s11 }
  0x24   : > { %1238 = dma.hbm_to_vmem [thread:$0]  (!%p1236_p0), %s412_s11, 128, %s414_s21, %s402_s15  }
  0x25   : > { %s425_s13 = scalar_lea.sflag (!%p419_p3), [#allocation5], %s1605_s17  ;;  %s428_s12 = scalar_lea.vmem (!%p419_p3), [#allocation4], %s1816_s25 }
  0x27   : > { %1418 = dma.done.wait (%p1578_p8), %s425_s13, 128  }
  0x28   : > { %1420 = vsyncadd (%p1578_p8), %s425_s13, 4294967168  ;;  %s1831_s1 = sld [smem:[#allocation14_spill]]  ;;  %v1627_v4 = vld [vmem:[%s428_s12] sm:$0xff]  ;;  %vm485_vm0 = vcmask 261120   ;;  %vm509_vm1 = vcmask 785408   ;;  %s1449_s16 = smov 88  }
  0x29   : > { %s1832_s2 = sld [smem:[#allocation15_spill]]  ;;  %s1450_s12 = smov 96   ;;  %vm524_vm2 = vcmask 64512   ;;  %v601_v12 = vld [vmem:[%s1800_s3] sm:$0xff]  ;;  %v710_v48 = vld [vmem:[%s1800_s3 + $0x8] sm:$0xff] }
  0x2a   : > { %s1451_s11 = smov 120   ;;  %s1452_s18 = smov 56   ;;  %620 = vmatpush.msra.mxu3 %v601_v12  ;;  %v1306_v37 = vld [vmem:[%s1801_s4] ss:$0 sm:$0xff]  ;;  %729 = vmatpush.msra.mxu1 %v710_v48 }
  0x2b   : > { %s1453_s21 = smov 112   ;;  %s1454_s24 = smov 104   ;;  %517 = vst.msk [vmem:[#allocation3] sm:$0xff] %vm485_vm0, %v1306_v37 }
  0x2c   : > { %s1455_s15 = smov 64   ;;  %s1456_s20 = smov 80  }
  0x2d   : > { %s1100_s13 = scalar_lea.sflag [#allocation6], %s1605_s17 }
  0x2e   : > { %v480_v0 = vld [vmem:[%s1831_s1 + $0x18] sm:$0xff]  ;;  %v479_v1 = vld [vmem:[%s1831_s1 + $0x10] sm:$0xff]  ;;  %v478_v2 = vld [vmem:[%s1831_s1 + $0x8] sm:$0xff] }
  0x2f   : > { %501 = vmatpush.msra.mxu0 %v480_v0  ;;  %v477_v3 = vld [vmem:[%s1831_s1] sm:$0xff] }
  0x30   : > { %v1305_v5 = vld [vmem:[%s1832_s2] ss:$0 sm:$0xff] }
  0x31   : > { %502 = vmatpush.msra.mxu0 %v479_v1 }
  0x32   : > { %v600_v41 = vld [vmem:[#allocation3] sm:$0xff] }
  0x33   : > { %503 = vmatpush.msra.mxu0 %v478_v2 }
  0x35   : > { %504 = vmatpush.msra.mxu0 %v477_v3 }
  0x36   : > { %1208 = vmatmul.msk.f32.vlgmr.msra.gmra.mxu0 %vm485_vm0, %v1627_v4 }
  0xb3   : > { %v506_v6 = vpop.f32.mrf.mxu0 }
  0xb4   : > { %v507_v7 = vadd.f32 %v1305_v5, %v506_v6 }
  0xb6   : > { %510 = vst.msk [vmem:[#allocation2] sm:$0xff] %vm509_vm1, %v507_v7 }
  0xbd   : > { %v1634_v8 = vld [vmem:[#allocation2] sm:$0xff] }
  0xbe   : > { %633 = vrot.lane.b32.xlu2 %v1634_v8, %s1449_s16  ;;  %522 = vrot.lane.b32.xlu0 %v1634_v8, %s1450_s12  ;;  %s1457_s12 = smov 72  }
  0xc6   : > { %630 = vrot.lane.b32.xlu2 %v1634_v8, %s1451_s11 }
 0x118   : > { %v634_v30 = vpop.permute.xlu2 %633 }
 0x120   : > { %v631_v33 = vpop.permute.xlu2 %630 }
 0x130   : > { %v523_v9 = vpop.permute.xlu0 %522 }
 0x131   : > { %1209 = vmatpush.xpose.msk.msrb.mxu0 %vm524_vm2, %v523_v9 }
 0x134   : > { %1210 = vmatmul.msk.f32.vlgmr.msrb.gmra.mxu0 %vm524_vm2, %v1634_v8 }
 0x1b1   : > { %v547_v10 = vpop.f32.mrf.mxu0 }
 0x1b2   : > { %v550_v11 = vsel %vm524_vm2, %v547_v10, -inf }
 0x1b3   : > { %551 = vmax.xlane.f32.xlu0 %v550_v11 }
 0x1c7   : > { %683 = vrot.lane.b32.xlu0 %v1634_v8, %s1452_s18 }
 0x1cf   : > { %739 = vrot.lane.b32.xlu0 %v1634_v8, %s1453_s21  ;;  %s1458_s21 = smov 48  }
 0x1d7   : > { %848 = vrot.lane.b32.xlu0 %v1634_v8, %s1454_s24  ;;  %s1459_s24 = smov 40  }
 0x226   : > { %v552_v13 = vpop.xlane.xlu0 %551 }
 0x227   : > { %v553_v14 = vsub.f32 %v547_v10, %v552_v13 }
 0x229   : > { %v554_v15 = vmul.f32 1.442695, %v553_v14 }
 0x22b   : > { %1313 = vpow2.f32 %v554_v15 }
 0x231   : > { %v1314_v16 = vpop.eup %1313 }
 0x232   : > { %v556_v17 = vsel %vm524_vm2, %v1314_v16, 0.0 }
 0x233   : > { %557 = vadd.xlane.f32.xlu1 %v556_v17 }
 0x239   : > { %v684_v18 = vpop.permute.xlu0 %683 }
 0x23a   : > { %704 = vmatpush.msrb.mxu3 %v684_v18 }
 0x241   : > { %v740_v46 = vpop.permute.xlu0 %739 }
 0x249   : > { %v849_v7 = vpop.permute.xlu0 %848 }
 0x24c   : > { %574 = vrot.lane.b32.xlu1 %v1634_v8, %s1455_s15  ;;  %s1835_s15 = sld [smem:[#allocation17_spill]] }
 0x2a6   : > { %v558_v19 = vpop.xlane.xlu1 %557 }
 0x2a7   : > { %1315 = vrcp.f32 %v558_v19  ;;  %v570_v25 = vand.u32 2147483648, %v558_v19  ;;  %vm564_vm4 = vweird.f32 %v558_v19  ;;  %v568_v26 = vand.u32 2147483647, %v558_v19 }
 0x2a9   : > { %v571_v28 = vor.u32 1.1754944e-38, %v570_v25  ;;  %vm569_vm6 = vcmp.eq.f32.partialorder %v568_v26, 8.507059e+37 }
 0x2ad   : > { %v1316_v20 = vpop.eup %1315 }
 0x2ae   : > { %v560_v21 = vmul.f32 %v1316_v20, %v558_v19  ;;  %vm565_vm3 = vweird.f32 %v1316_v20 }
 0x2af   : > { %vm566_vm5 = vmor %vm564_vm4, %vm565_vm3 }
 0x2b0   : > { %v561_v22 = vsub.f32 1.0, %v560_v21 }
 0x2b2   : > { %v562_v23 = vmul.f32 %v1316_v20, %v561_v22 }
 0x2b4   : > { %v563_v24 = vadd.f32 %v1316_v20, %v562_v23 }
 0x2b6   : > { %v567_v27 = vsel %vm566_vm5, %v1316_v20, %v563_v24 }
 0x2b7   : > { %v572_v29 = vsel %vm569_vm6, %v571_v28, %v567_v27 }
 0x2b8   : > { %v573_v32 = vmul.f32 %v1314_v16, %v572_v29 }
 0x2be   : > { %v575_v31 = vpop.permute.xlu1 %574 }
 0x2bf   : > { %595 = vmatpush.msra.mxu2 %v575_v31 }
 0x2c0   : > { %1211 = vmatmul.msk.f32.vlgmr.msra.gmra.mxu2 %vm524_vm2, %v573_v32  ;;  %v819_v32 = vld [vmem:[%s1800_s3 + $0x10] sm:$0xff] }
 0x2c1   : > { %1213 = vmatpush.xpose.msk.msrb.mxu2 %vm524_vm2, %v634_v30 }
 0x2c8   : > { %1214 = vmatmul.msk.f32.vlgmr.msrb.gmra.mxu2 %vm524_vm2, %v631_v33  ;;  %v928_v33 = vld [vmem:[%s1800_s3 + $0x18] sm:$0xff] }
 0x343   : > { %v597_v34 = vpop.f32.mrf.mxu2 }
 0x344   : > { %1212 = vmatmul.msk.f32.vlgmr.msra.gmra.mxu3 %vm524_vm2, %v597_v34 }
 0x345   : > { %838 = vmatpush.msra.mxu3 %v819_v32  ;;  %v1029_v32 = vld [vmem:[%s1806_s9] sm:$0xff] }
 0x34b   : > { %v656_v35 = vpop.f32.mrf.mxu2 }
 0x34c   : > { %v659_v36 = vsel %vm524_vm2, %v656_v35, -inf }
 0x34d   : > { %660 = vmax.xlane.f32.xlu2 %v659_v36 }
 0x365   : > { %742 = vrot.lane.b32.xlu2 %v1634_v8, %s1456_s20  ;;  %s1228_s20 = sshll.u32 %s1439_s28, 3  ;;  %s1837_s28 = sshll.u32 %s1605_s17, 3 }
 0x366   : > { %s471_s0 = scalar_lea.vmem [#allocation7], %s1837_s28 }
 0x367   : > { %s1113_s1 = sshll.u32 %s471_s0, 4  ;;  %s1114_s1 = int_to_ptr.vmem [resolvable:$true] %s1113_s1 }
 0x3c0   : > { %v661_v38 = vpop.xlane.xlu2 %660 }
 0x3c1   : > { %v662_v39 = vsub.f32 %v656_v35, %v661_v38 }
 0x3c3   : > { %v663_v40 = vmul.f32 1.442695, %v662_v39 }
 0x3c5   : > { %1317 = vpow2.f32 %v663_v40 }
 0x3c7   : > { %v622_v42 = vpop.f32.mrf.mxu3 }
 0x3c8   : > { %v625_v43 = vadd.f32 %v622_v42, %v600_v41  ;;  %v743_v44 = vpop.permute.xlu2 %742 }
 0x3c9   : > { %1217 = vmatpush.xpose.msk.msra.mxu0 %vm524_vm2, %v743_v44 }
 0x3ca   : > { %626 = vst.msk [vmem:[#allocation3] sm:$0xff] %vm485_vm0, %v625_v43 }
 0x3cb   : > { %v1318_v45 = vpop.eup %1317 }
 0x3cc   : > { %1218 = vmatmul.msk.f32.vlgmr.msra.gmra.mxu0 %vm524_vm2, %v740_v46  ;;  %v665_v47 = vsel %vm524_vm2, %v1318_v45, 0.0 }
 0x3cd   : > { %666 = vadd.xlane.f32.xlu1 %v665_v47 }
 0x3d1   : > { %v709_v9 = vld [vmem:[#allocation3] sm:$0xff] }
 0x3e6   : > { %851 = vrot.lane.b32.xlu1 %v1634_v8, %s1457_s12  ;;  %s1833_s12 = sld [smem:[#allocation16_spill]] }
 0x440   : > { %v667_v49 = vpop.xlane.xlu1 %666 }
 0x441   : > { %1319 = vrcp.f32 %v667_v49  ;;  %v679_v55 = vand.u32 2147483648, %v667_v49  ;;  %v677_v57 = vand.u32 2147483647, %v667_v49  ;;  %vm673_vm8 = vweird.f32 %v667_v49 }
 0x443   : > { %v680_v59 = vor.u32 1.1754944e-38, %v679_v55  ;;  %vm678_vm10 = vcmp.eq.f32.partialorder %v677_v57, 8.507059e+37  ;;  %v1460_v57 = vmov 32.0  }
 0x447   : > { %v1320_v50 = vpop.eup %1319 }
 0x448   : > { %v669_v51 = vmul.f32 %v1320_v50, %v667_v49  ;;  %vm674_vm7 = vweird.f32 %v1320_v50 }
 0x449   : > { %v765_v52 = vpop.f32.mrf.mxu0  ;;  %vm675_vm9 = vmor %vm673_vm8, %vm674_vm7  ;;  %vm1041_vm8 = vcmask 523264  }
 0x44a   : > { %v670_v53 = vsub.f32 1.0, %v669_v51  ;;  %v768_v54 = vsel %vm524_vm2, %v765_v52, -inf }
 0x44b   : > { %769 = vmax.xlane.f32.xlu2 %v768_v54 }
 0x44c   : > { %v671_v56 = vmul.f32 %v1320_v50, %v670_v53 }
 0x44e   : > { %v672_v58 = vadd.f32 %v1320_v50, %v671_v56 }
 0x450   : > { %v676_v60 = vsel %vm675_vm9, %v1320_v50, %v672_v58 }
 0x451   : > { %v681_v61 = vsel %vm678_vm10, %v680_v59, %v676_v60 }
 0x452   : > { %v682_v62 = vmul.f32 %v1318_v45, %v681_v61 }
 0x454   : > { %1215 = vmatmul.msk.f32.vlgmr.msrb.gmra.mxu3 %vm524_vm2, %v682_v62 }
 0x458   : > { %v852_v63 = vpop.permute.xlu1 %851 }
 0x459   : > { %1221 = vmatpush.xpose.msk.msrb.mxu1 %vm524_vm2, %v852_v63 }
 0x4be   : > { %v770_v0 = vpop.xlane.xlu2 %769 }
 0x4bf   : > { %v771_v1 = vsub.f32 %v765_v52, %v770_v0 }
 0x4c1   : > { %v772_v2 = vmul.f32 1.442695, %v771_v1 }
 0x4c3   : > { %1321 = vpow2.f32 %v772_v2 }
 0x4c9   : > { %v1322_v3 = vpop.eup %1321 }
 0x4ca   : > { %v774_v5 = vsel %vm524_vm2, %v1322_v3, 0.0 }
 0x4cb   : > { %775 = vadd.xlane.f32.xlu1 %v774_v5  ;;  %v1000_v5 = vld [vmem:[%s1804_s7 + $0x18] sm:$0xff] }
 0x4cc   : > { %1020 = vmatpush.msrb.mxu3 %v1000_v5 }
 0x4d7   : > { %v706_v6 = vpop.f32.mrf.mxu3 }
 0x4d8   : > { %1216 = vmatmul.msk.f32.vlgmr.msra.gmra.mxu1 %vm524_vm2, %v706_v6  ;;  %v999_v6 = vld [vmem:[%s1804_s7 + $0x10] sm:$0xff] }
 0x4d9   : > { %1021 = vmatpush.msrb.mxu3 %v999_v6 }
 0x4e0   : > { %1222 = vmatmul.msk.f32.vlgmr.msrb.gmra.mxu1 %vm524_vm2, %v849_v7  ;;  %v998_v7 = vld [vmem:[%s1804_s7 + $0x8] sm:$0xff] }
 0x4e1   : > { %1022 = vmatpush.msrb.mxu3 %v998_v7 }
 0x53e   : > { %v776_v14 = vpop.xlane.xlu1 %775 }
 0x53f   : > { %1323 = vrcp.f32 %v776_v14  ;;  %v788_v23 = vand.u32 2147483648, %v776_v14  ;;  %vm782_vm12 = vweird.f32 %v776_v14  ;;  %v786_v25 = vand.u32 2147483647, %v776_v14 }
 0x541   : > { %v789_v28 = vor.u32 1.1754944e-38, %v788_v23  ;;  %vm787_vm14 = vcmp.eq.f32.partialorder %v786_v25, 8.507059e+37 }
 0x545   : > { %v1324_v15 = vpop.eup %1323 }
 0x546   : > { %v778_v16 = vmul.f32 %v1324_v15, %v776_v14  ;;  %vm783_vm11 = vweird.f32 %v1324_v15 }
 0x547   : > { %vm784_vm13 = vmor %vm782_vm12, %vm783_vm11 }
 0x548   : > { %v779_v18 = vsub.f32 1.0, %v778_v16 }
 0x54a   : > { %v780_v21 = vmul.f32 %v1324_v15, %v779_v18 }
 0x54c   : > { %v781_v22 = vadd.f32 %v1324_v15, %v780_v21 }
 0x54e   : > { %v785_v27 = vsel %vm784_vm13, %v1324_v15, %v781_v22  ;;  %v1033_v15 = vld [vmem:[%s1806_s9 + $0x20] sm:$0xff] }
 0x54f   : > { %v790_v29 = vsel %vm787_vm14, %v789_v28, %v785_v27  ;;  %v1308_v27 = vld [vmem:[%s1803_s6] ss:$0 sm:$0xff] }
 0x550   : > { %v791_v31 = vmul.f32 %v1322_v3, %v790_v29 }
 0x555   : > { %v731_v10 = vpop.f32.mrf.mxu1 }
 0x556   : > { %v734_v11 = vadd.f32 %v731_v10, %v709_v9  ;;  %v997_v9 = vld [vmem:[%s1804_s7] sm:$0xff]  ;;  %v1036_v10 = vld [vmem:[%s1806_s9 + $0x38] sm:$0xff] }
 0x557   : > { %1023 = vmatpush.msrb.mxu3 %v997_v9  ;;  %1053 = vmatpush.msra.mxu1 %v1036_v10 }
 0x558   : > { %735 = vst.msk [vmem:[#allocation3] sm:$0xff] %vm485_vm0, %v734_v11  ;;  %v1035_v11 = vld [vmem:[%s1806_s9 + $0x30] sm:$0xff] }
 0x559   : > { %1054 = vmatpush.msra.mxu1 %v1035_v11 }
 0x55d   : > { %v874_v12 = vpop.f32.mrf.mxu1 }
 0x55e   : > { %v877_v13 = vsel %vm524_vm2, %v874_v12, -inf }
 0x55f   : > { %878 = vmax.xlane.f32.xlu0 %v877_v13  ;;  %v818_v48 = vld [vmem:[#allocation3] sm:$0xff] }
 0x573   : > { %792 = vrot.lane.b32.xlu0 %v1634_v8, %s1458_s21  ;;  %s1834_s21 = sld [smem:[#allocation18_spill]] }
 0x579   : > { %s1385_s18 = scalar_lea.hbm %s1834_s21, 16 }
 0x5d2   : > { %v879_v17 = vpop.xlane.xlu0 %878 }
 0x5d3   : > { %v880_v19 = vsub.f32 %v874_v12, %v879_v17  ;;  %v1034_v12 = vld [vmem:[%s1806_s9 + $0x28] sm:$0xff]  ;;  %v1032_v17 = vld [vmem:[%s1806_s9 + $0x18] sm:$0xff] }
 0x5d4   : > { %1055 = vmatpush.msra.mxu1 %v1034_v12 }
 0x5d5   : > { %v881_v20 = vmul.f32 1.442695, %v880_v19 }
 0x5d6   : > { %1056 = vmatpush.msra.mxu1 %v1033_v15 }
 0x5d7   : > { %1325 = vpow2.f32 %v881_v20 }
 0x5d8   : > { %1057 = vmatpush.msra.mxu1 %v1032_v17 }
 0x5dd   : > { %v1326_v24 = vpop.eup %1325 }
 0x5de   : > { %v883_v26 = vsel %vm524_vm2, %v1326_v24, 0.0 }
 0x5df   : > { %884 = vadd.xlane.f32.xlu2 %v883_v26 }
 0x5e5   : > { %v793_v30 = vpop.permute.xlu0 %792 }
 0x5e6   : > { %813 = vmatpush.msra.mxu2 %v793_v30  ;;  %v1031_v30 = vld [vmem:[%s1806_s9 + $0x10] sm:$0xff] }
 0x5e7   : > { %1219 = vmatmul.msk.f32.vlgmr.msra.gmra.mxu2 %vm524_vm2, %v791_v31  ;;  %1058 = vmatpush.msra.mxu1 %v1031_v30  ;;  %v1030_v31 = vld [vmem:[%s1806_s9 + $0x8] sm:$0xff] }
 0x5e8   : > { %947 = vmatpush.msrb.mxu2 %v928_v33  ;;  %v1309_v33 = vld [vmem:[%s1805_s8] ss:$0 sm:$0xff] }
 0x5e9   : > { %1059 = vmatpush.msra.mxu1 %v1030_v31 }
 0x5eb   : > { %1060 = vmatpush.msra.mxu1 %v1029_v32 }
 0x5f7   : > { %901 = vrot.lane.b32.xlu2 %v1634_v8, %s1459_s24  ;;  %s1111_s24 = scalar_lea.hbm %s1834_s21, %s1228_s20 }
 0x5f8   : > { %s1115_s2 = sshll.u32 %s1111_s24, 4  ;;  %s1116_s2 = int_to_ptr.hbm [resolvable:$true] %s1115_s2 }
 0x5f9   : > { %s1379_s16 = sshra.s32 %s1116_s2, 4  ;;  %s1380_s16 = int_to_ptr.hbm [resolvable:$true] %s1379_s16 }
 0x5fa   : > { %s1381_s20 = scalar_lea.hbm %s1380_s16, 8  ;;  %p1386_p7 = scmp.lt.s32.totalorder %s1380_s16, %s1834_s21 }
 0x5fb   : > { %p1382_p4 = scmp.ne.s32.totalorder %s1380_s16, %s1381_s20  ;;  %p1387_p8 = scmp.lt.s32.totalorder %s1385_s18, %s1381_s20 }
 0x5fd   : > { %p1383_p5 = pnand %p1382_p4, %p1582_p9  ;;  %p1388_p10 = por %p1387_p8, %p1386_p7 }
 0x5ff   : > { %p1384_p6 = pneg %p1383_p5 }
 0x601   : > { %p1389_p13 = pnand %p1388_p10, %p1384_p6 }
 0x652   : > { %v885_v34 = vpop.xlane.xlu2 %884 }
 0x653   : > { %1327 = vrcp.f32 %v885_v34  ;;  %v897_v39 = vand.u32 2147483648, %v885_v34  ;;  %v895_v8 = vand.u32 2147483647, %v885_v34  ;;  %vm891_vm1 = vweird.f32 %v885_v34 }
 0x654   : > { %1329 = vrcp.f32 %v1460_v57  ;;  %v1312_v57 = vld [vmem:[%s1835_s15] ss:$0 sm:$0xff] }
 0x655   : > { %v898_v42 = vor.u32 1.1754944e-38, %v897_v39  ;;  %vm896_vm4 = vcmp.eq.f32.partialorder %v895_v8, 8.507059e+37 }
 0x659   : > { %v1328_v35 = vpop.eup %1327 }
 0x65a   : > { %v887_v36 = vmul.f32 %v1328_v35, %v885_v34  ;;  %v902_v37 = vpop.permute.xlu2 %901  ;;  %vm892_vm15 = vweird.f32 %v1328_v35  ;;  %v1330_v58 = vpop.eup %1329 }
 0x65b   : > { %922 = vmatpush.msrb.mxu0 %v902_v37  ;;  %vm893_vm3 = vmor %vm891_vm1, %vm892_vm15  ;;  %v964_v59 = vmul.f32 32.0, %v1330_v58  ;;  %v1310_v37 = vld [vmem:[%s1807_s10] ss:$0 sm:$0xff] }
 0x65c   : > { %v888_v38 = vsub.f32 1.0, %v887_v36 }
 0x65d   : > { %v965_v60 = vsub.f32 1.0, %v964_v59 }
 0x65e   : > { %v889_v40 = vmul.f32 %v1328_v35, %v888_v38 }
 0x65f   : > { %v966_v61 = vmul.f32 %v1330_v58, %v965_v60 }
 0x660   : > { %v890_v41 = vadd.f32 %v1328_v35, %v889_v40 }
 0x661   : > { %v967_v62 = vadd.f32 %v1330_v58, %v966_v61 }
 0x662   : > { %v894_v43 = vsel %vm893_vm3, %v1328_v35, %v890_v41 }
 0x663   : > { %v899_v44 = vsel %vm896_vm4, %v898_v42, %v894_v43 }
 0x664   : > { %v900_v45 = vmul.f32 %v1326_v24, %v899_v44  ;;  %v1307_v24 = vld [vmem:[%s1802_s5] ss:$0 sm:$0xff] }
 0x666   : > { %1223 = vmatmul.msk.f32.vlgmr.msrb.gmra.mxu0 %vm524_vm2, %v900_v45 }
 0x66a   : > { %v815_v46 = vpop.f32.mrf.mxu2 }
 0x66b   : > { %1220 = vmatmul.msk.f32.vlgmr.msra.gmra.mxu3 %vm524_vm2, %v815_v46 }
 0x6e3   : > { %v924_v47 = vpop.f32.mrf.mxu0 }
 0x6e4   : > { %1224 = vmatmul.msk.f32.vlgmr.msrb.gmra.mxu2 %vm524_vm2, %v924_v47  ;;  %vm968_vm2 = vweird.f32 %v1330_v58 }
 0x6e5   : > { %v1694_v63 = vsel %vm968_vm2, %v1330_v58, %v967_v62 }
 0x6ee   : > { %v840_v49 = vpop.f32.mrf.mxu3 }
 0x6ef   : > { %v843_v50 = vadd.f32 %v840_v49, %v818_v48 }
 0x6f1   : > { %844 = vst.msk [vmem:[#allocation3] sm:$0xff] %vm485_vm0, %v843_v50 }
 0x6f8   : > { %v927_v51 = vld [vmem:[#allocation3] sm:$0xff] }
 0x767   : > { %v949_v52 = vpop.f32.mrf.mxu2 }
 0x768   : > { %v952_v53 = vadd.f32 %v949_v52, %v927_v51 }
 0x76a   : > { %953 = vst.msk [vmem:[#allocation3] sm:$0xff] %vm485_vm0, %v952_v53 }
 0x771   : > { %v956_v54 = vld [vmem:[#allocation3] sm:$0xff] }
 0x772   : > { %v957_v55 = vadd.f32 %v956_v54, %v1627_v4 }
 0x774   : > { %v960_v56 = vsel %vm485_vm0, %v957_v55, 0.0 }
 0x775   : > { %961 = vadd.xlane.f32.xlu1 %v960_v56 }
 0x7e8   : > { %v962_v0 = vpop.xlane.xlu1 %961 }
 0x7e9   : > { %v970_v1 = vmul.f32 %v1694_v63, %v962_v0 }
 0x7eb   : > { %v971_v2 = vsub.f32 %v957_v55, %v970_v1  ;;  %v1311_v55 = vld [vmem:[%s1833_s12] ss:$0 sm:$0xff] }
 0x7ed   : > { %v972_v3 = vmul.f32 %v971_v2, %v971_v2 }
 0x7ef   : > { %v973_v4 = vsel %vm485_vm0, %v972_v3, 0.0 }
 0x7f0   : > { %974 = vadd.xlane.f32.xlu0 %v973_v4 }
 0x863   : > { %v975_v13 = vpop.xlane.xlu0 %974 }
 0x864   : > { %v976_v14 = vmul.f32 0.032258064, %v975_v13 }
 0x866   : > { %v977_v16 = vadd.f32 1e-05, %v976_v14 }
 0x868   : > { %1331 = vrsqrt.f32 %v977_v16  ;;  %vm984_vm6 = vweird.f32 %v977_v16 }
 0x86e   : > { %v1332_v18 = vpop.eup %1331 }
 0x86f   : > { %v979_v19 = vmul.f32 %v1332_v18, %v977_v16  ;;  %vm985_vm5 = vweird.f32 %v1332_v18 }
 0x870   : > { %vm986_vm7 = vmor %vm984_vm6, %vm985_vm5 }
 0x871   : > { %v980_v20 = vmul.f32 %v1332_v18, %v979_v19 }
 0x873   : > { %v981_v21 = vmul.f32 0.5, %v980_v20 }
 0x875   : > { %v982_v22 = vsub.f32 1.5, %v981_v21 }
 0x877   : > { %v983_v23 = vmul.f32 %v1332_v18, %v982_v22 }
 0x879   : > { %v987_v25 = vsel %vm986_vm7, %v1332_v18, %v983_v23 }
 0x87a   : > { %v988_v26 = vmul.f32 %v987_v25, %v971_v2 }
 0x87c   : > { %v992_v28 = vmul.f32 %v1307_v24, %v988_v26 }
 0x87e   : > { %v996_v29 = vadd.f32 %v1308_v27, %v992_v28 }
 0x880   : > { %1225 = vmatmul.msk.f32.vlgmr.msrb.gmra.mxu3 %vm485_vm0, %v996_v29 }
 0x903   : > { %v1025_v34 = vpop.f32.mrf.mxu3 }
 0x904   : > { %v1026_v35 = vadd.f32 %v1309_v33, %v1025_v34 }
 0x906   : > { %v1028_v36 = vmax.f32 %v1026_v35, 0.0 }
 0x908   : > { %1226 = vmatmul.msk.f32.vlgmr.msra.gmra.mxu1 %vm1041_vm8, %v1028_v36 }
 0x985   : > { %v1062_v38 = vpop.f32.mrf.mxu1 }
 0x986   : > { %v1063_v39 = vadd.f32 %v1310_v37, %v1062_v38 }
 0x988   : > { %v1065_v40 = vadd.f32 %v1063_v39, %v996_v29 }
 0x98a   : > { %v1068_v8 = vsel %vm485_vm0, %v1065_v40, 0.0 }
 0x98b   : > { %1069 = vadd.xlane.f32.xlu1 %v1068_v8 }
 0x9fe   : > { %v1070_v41 = vpop.xlane.xlu1 %1069 }
 0x9ff   : > { %v1071_v42 = vmul.f32 %v1070_v41, %v1694_v63 }
 0xa01   : > { %v1072_v43 = vsub.f32 %v1065_v40, %v1071_v42 }
 0xa03   : > { %v1073_v44 = vmul.f32 %v1072_v43, %v1072_v43 }
 0xa05   : > { %v1074_v45 = vsel %vm485_vm0, %v1073_v44, 0.0 }
 0xa06   : > { %1075 = vadd.xlane.f32.xlu2 %v1074_v45 }
 0xa79   : > { %v1076_v46 = vpop.xlane.xlu2 %1075 }
 0xa7a   : > { %v1077_v47 = vmul.f32 0.032258064, %v1076_v46 }
 0xa7c   : > { %v1078_v48 = vadd.f32 1e-05, %v1077_v47 }
 0xa7e   : > { %1333 = vrsqrt.f32 %v1078_v48  ;;  %vm1085_vm10 = vweird.f32 %v1078_v48 }
 0xa84   : > { %v1334_v49 = vpop.eup %1333 }
 0xa85   : > { %v1080_v50 = vmul.f32 %v1334_v49, %v1078_v48  ;;  %vm1086_vm9 = vweird.f32 %v1334_v49 }
 0xa86   : > { %vm1087_vm11 = vmor %vm1085_vm10, %vm1086_vm9 }
 0xa87   : > { %v1081_v51 = vmul.f32 %v1334_v49, %v1080_v50 }
 0xa89   : > { %v1082_v52 = vmul.f32 0.5, %v1081_v51 }
 0xa8b   : > { %v1083_v53 = vsub.f32 1.5, %v1082_v52 }
 0xa8d   : > { %v1084_v54 = vmul.f32 %v1334_v49, %v1083_v53 }
 0xa8f   : > { %v1088_v56 = vsel %vm1087_vm11, %v1334_v49, %v1084_v54 }
 0xa90   : > { %v1089_v58 = vmul.f32 %v1088_v56, %v1072_v43 }
 0xa92   : > { %v1093_v59 = vmul.f32 %v1311_v55, %v1089_v58 }
 0xa94   : > { %v1097_v60 = vadd.f32 %v1312_v57, %v1093_v59 }
 0xa96   : > { %1098 = vst.msk [vmem:[%s471_s0] sm:$0xff] %vm485_vm0, %v1097_v60 }
 0xa97   : > { %1392 = shalt.err (!%p1389_p13)
}
 0xa98   : > { %1233 = dma.vmem_to_hbm [thread:$0]  (%p1582_p9), %s1114_s1, 128, %s1116_s2, %s1100_s13  }
 0xa99 PF: > { %s1838_s0 = sld [smem:[#allocation10_spill]]  ;;  %p1240_p0 = pnand %p1202_p12, %p1589_p11 }
 0xa9b   : > { %p1241_p1 = pneg %p1240_p0 }
 0xa9f   : > { %s1127_s17 = sand.u32 1, %s1838_s0  }
 0xaa0   : > { %s1128_s19 = scalar_lea.sflag [#allocation6], %s1127_s17 }
 0xaa1   : > { %1422 = dma.done.wait (%p1241_p1), %s1128_s19, 128  }
 0xaa2   : > { %1424 = vsyncadd (%p1241_p1), %s1128_s19, 4294967168  ;;  %s29_s30 = sadd.s32 1, %s1447_s30   ;;  %s1839_s1 = sld [smem:[#allocation11_spill]] }
 0xaa3   : > { %p26_p2 = scmp.ge.s32.totalorder %s29_s30, 4   ;;  %s1840_s25 = smov %s1431_s26 }
 0xaa4   : > { %s1841_s26 = smov %s1435_s27  ;;  %s1842_s27 = smov %s1587_s22 }
 0xaa5   : > { %s1843_s28 = smov %s1443_s29  ;;  %28 = sbr.rel (!%p26_p2) target bundleno = 13 (0xd), region = 123 }
 0xaa8   : > { %s1844_s29 = smov %s1839_s1 }
 0xaaa   :  { %1134 = vsyncpa [#allocation5], 1 }
 0xaab   :  { %1136 = vsyncpa [#allocation5 + $0x1], 1 }
 0xaac   :  { %1137 = vsyncpa [#allocation6], 1 }
 0xaad   :  { %1139 = vsyncpa [#allocation6 + $0x1], 1 }

</bundles_post_ra>
